<compile_context>
chip_gen: v7x
topology: tpu7x:2x2x1
jax: 0.10.0
libtpu: 0.0.40
codegen_flags: <defaults>
</compile_context>

<pallas_src>
import jax
import jax.numpy as jnp
from jax.experimental import pallas as pl
from jax.experimental.pallas import tpu as pltpu


def _fused_linear_kernel(w3_ref, ili_ref, tot_ref, ww_ref, wi_ref, wt_ref, b_ref, o_ref):
    # w3_ref: (Bt, T, F)  ili_ref/tot_ref: (Bt, T)
    # ww_ref/wi_ref/wt_ref: (T, O)  b_ref: (1, O)  o_ref: (Bt, O)
    wf = w3_ref[...][:, :, 0]  # only weather feature 0 feeds the linear layer
    acc = jnp.dot(wf, ww_ref[...], preferred_element_type=jnp.float32)
    acc = acc + jnp.dot(ili_ref[...], wi_ref[...], preferred_element_type=jnp.float32)
    acc = acc + jnp.dot(tot_ref[...], wt_ref[...], preferred_element_type=jnp.float32)
    o_ref[...] = (acc + b_ref[...]).astype(o_ref.dtype)


def fused_linear_pallas(weather, ili_past, tot_cases_past,
                        w_weather, w_ili, w_tot, bias2, *, batch_tile=256):
    """out[b, o] = sum_t ( weather[b,t,0]*Ww[t,o] + ili[b,t]*Wi[t,o] + tot[b,t]*Wt[t,o] ) + bias[o]"""
    B, T, F = weather.shape
    O = bias2.shape[1]
    itemsize = 4  # float32
    cost = pl.CostEstimate(
        flops=2 * B * (3 * T) * O,
        transcendentals=0,
        bytes_accessed=itemsize * (B * T * F + 2 * B * T + 3 * T * O + O + B * O),
    )
    out_shape = jax.ShapeDtypeStruct((B, O), jnp.float32)
    args = (weather, ili_past, tot_cases_past, w_weather, w_ili, w_tot, bias2)

    if B > batch_tile and B % batch_tile == 0:
        # Large batch: tile the batch axis with sublane-aligned blocks, parallel across cores.
        TB = batch_tile
        return pl.pallas_call(
            _fused_linear_kernel,
            out_shape=out_shape,
            grid=(B // TB,),
            in_specs=[
                pl.BlockSpec((TB, T, F), lambda i: (i, 0, 0)),
                pl.BlockSpec((TB, T), lambda i: (i, 0)),
                pl.BlockSpec((TB, T), lambda i: (i, 0)),
                pl.BlockSpec((T, O), lambda i: (0, 0)),
                pl.BlockSpec((T, O), lambda i: (0, 0)),
                pl.BlockSpec((T, O), lambda i: (0, 0)),
                pl.BlockSpec((1, O), lambda i: (0, 0)),
            ],
            out_specs=pl.BlockSpec((TB, O), lambda i: (i, 0)),
            compiler_params=pltpu.CompilerParams(dimension_semantics=("parallel",)),
            cost_estimate=cost,
        )(*args)

    # Small batch: single whole-array block, no grid bookkeeping at all.
    vmem = pl.BlockSpec(memory_space=pltpu.MemorySpace.VMEM)
    return pl.pallas_call(
        _fused_linear_kernel,
        out_shape=out_shape,
        in_specs=[vmem] * 7,
        out_specs=vmem,
        cost_estimate=cost,
    )(*args)


class LinearFluPredictorPallas:
    """JAX/Pallas port of LinearFluPredictor. Parameters created deterministically (nn.Linear init)."""

    def __init__(self, input_length, output_length, key):
        assert input_length % 3 == 0, "input_length must be 3 * num_timesteps"
        kw, kb = jax.random.split(key)
        bound = 1.0 / jnp.sqrt(jnp.float32(input_length))
        # PyTorch nn.Linear stores weight as (out, in); keep the transposed (in, out) layout.
        # Row index `in` = 3*t + f  (f: 0=weather[:,:,0], 1=ili_past, 2=tot_cases_past).
        self.weight_full = jax.random.uniform(
            kw, (input_length, output_length), jnp.float32, -bound, bound
        )
        self.bias = jax.random.uniform(kb, (output_length,), jnp.float32, -bound, bound)
        # One-time weight-row permutation: split the interleaved rows into per-source blocks
        # so the kernel never has to build the interleaved `combined.view(B, -1)` layout.
        self.w_weather = self.weight_full[0::3, :]   # (T, O)
        self.w_ili = self.weight_full[1::3, :]       # (T, O)
        self.w_tot = self.weight_full[2::3, :]       # (T, O)
        # Pre-reshape bias once (not per call).
        self.bias2 = self.bias.reshape(1, output_length)

    def __call__(self, weather, mask, weather_index, coords, ili_past, tot_cases_past):
        # mask / weather_index / coords are unused by the reference forward pass.
        return fused_linear_pallas(
            weather, ili_past, tot_cases_past,
            self.w_weather, self.w_ili, self.w_tot, self.bias2,
        )


def _reference(weather, ili_past, tot_cases_past, weight_full, bias):
    combined = jnp.concatenate(
        [weather[:, :, :1], ili_past[:, :, None], tot_cases_past[:, :, None]], axis=2
    )
    B = combined.shape[0]
    return combined.reshape(B, -1) @ weight_full + bias


if __name__ == "__main__":
    key = jax.random.PRNGKey(0)
    k_w, k_i, k_t, k_c, k_p, k_w2, k_i2, k_t2 = jax.random.split(key, 8)

    T, F = 8, 4                # time steps, weather features
    input_length = 3 * T
    output_length = 4

    model = LinearFluPredictorPallas(input_length, output_length, k_p)

    # --- Test 1: small batch (grid-less single-block path) ---
    B = 2
    weather = jax.random.normal(k_w, (B, T, F), jnp.float32)
    ili_past = jax.random.normal(k_i, (B, T), jnp.float32)
    tot_cases_past = jax.random.normal(k_t, (B, T), jnp.float32)
    mask = jnp.ones((B, T), jnp.float32)
    weather_index = jnp.zeros((B, T), jnp.int32)
    coords = jax.random.normal(k_c, (B, 2), jnp.float32)

    out = model(weather, mask, weather_index, coords, ili_past, tot_cases_past)
    jax.block_until_ready(out)
    ref = _reference(weather, ili_past, tot_cases_past, model.weight_full, model.bias)
    assert out.shape == (B, output_length)
    assert jnp.allclose(out, ref, atol=1e-5), "small-batch mismatch vs reference"

    # --- Test 2: large batch (sublane-aligned batch tiles, parallel grid axis) ---
    B2 = 512
    weather2 = jax.random.normal(k_w2, (B2, T, F), jnp.float32)
    ili2 = jax.random.normal(k_i2, (B2, T), jnp.float32)
    tot2 = jax.random.normal(k_t2, (B2, T), jnp.float32)
    mask2 = jnp.ones((B2, T), jnp.float32)
    widx2 = jnp.zeros((B2, T), jnp.int32)
    coords2 = jnp.zeros((B2, 2), jnp.float32)

    out2 = model(weather2, mask2, widx2, coords2, ili2, tot2)
    jax.block_until_ready(out2)
    ref2 = _reference(weather2, ili2, tot2, model.weight_full, model.bias)
    assert out2.shape == (B2, output_length)
    assert jnp.allclose(out2, ref2, atol=1e-5), "large-batch mismatch vs reference"

    print("KERNEL_OK")
</pallas_src>

<mosaic_0001>
module attributes {stable_mosaic.version = 11 : i64} {
  func.func @_fused_linear_kernel(%arg0: memref<2x8x4xf32, #tpu.memory_space<vmem>>, %arg1: memref<2x8xf32, #tpu.memory_space<vmem>>, %arg2: memref<2x8xf32, #tpu.memory_space<vmem>>, %arg3: memref<8x4xf32, #tpu.memory_space<vmem>>, %arg4: memref<8x4xf32, #tpu.memory_space<vmem>>, %arg5: memref<8x4xf32, #tpu.memory_space<vmem>>, %arg6: memref<1x4xf32, #tpu.memory_space<vmem>>, %arg7: memref<2x4xf32, #tpu.memory_space<vmem>>) attributes {dimension_semantics = [], scalar_prefetch = 0 : i64, scratch_operands = 0 : i64, tpu.core_type = #tpu.core_type<tc>} {
    %c0 = arith.constant 0 : index
    %c0_0 = arith.constant 0 : index
    %c0_1 = arith.constant 0 : index
    %0 = vector.load %arg0[%c0, %c0_0, %c0_1] : memref<2x8x4xf32, #tpu.memory_space<vmem>>, vector<2x8x4xf32>
    %1 = vector.extract_strided_slice %0 {offsets = [0, 0, 0], sizes = [2, 8, 1], strides = [1, 1, 1]} : vector<2x8x4xf32> to vector<2x8x1xf32>
    %2 = vector.shape_cast %1 : vector<2x8x1xf32> to vector<2x8xf32>
    %c0_2 = arith.constant 0 : index
    %c0_3 = arith.constant 0 : index
    %3 = vector.load %arg3[%c0_2, %c0_3] : memref<8x4xf32, #tpu.memory_space<vmem>>, vector<8x4xf32>
    %cst = arith.constant dense<0.000000e+00> : vector<2x4xf32>
    %4 = tpu.matmul %2, %3, %cst {dimension_numbers = #tpu.dot_dimension_numbers<[1], [0], [0], [1], [0, 0, 1, 1], [], []>} : vector<2x8xf32>, vector<8x4xf32>, vector<2x4xf32> -> vector<2x4xf32>
    %c0_4 = arith.constant 0 : index
    %c0_5 = arith.constant 0 : index
    %5 = vector.load %arg1[%c0_4, %c0_5] : memref<2x8xf32, #tpu.memory_space<vmem>>, vector<2x8xf32>
    %c0_6 = arith.constant 0 : index
    %c0_7 = arith.constant 0 : index
    %6 = vector.load %arg4[%c0_6, %c0_7] : memref<8x4xf32, #tpu.memory_space<vmem>>, vector<8x4xf32>
    %cst_8 = arith.constant dense<0.000000e+00> : vector<2x4xf32>
    %7 = tpu.matmul %5, %6, %cst_8 {dimension_numbers = #tpu.dot_dimension_numbers<[1], [0], [0], [1], [0, 0, 1, 1], [], []>} : vector<2x8xf32>, vector<8x4xf32>, vector<2x4xf32> -> vector<2x4xf32>
    %8 = arith.addf %4, %7 : vector<2x4xf32>
    %c0_9 = arith.constant 0 : index
    %c0_10 = arith.constant 0 : index
    %9 = vector.load %arg2[%c0_9, %c0_10] : memref<2x8xf32, #tpu.memory_space<vmem>>, vector<2x8xf32>
    %c0_11 = arith.constant 0 : index
    %c0_12 = arith.constant 0 : index
    %10 = vector.load %arg5[%c0_11, %c0_12] : memref<8x4xf32, #tpu.memory_space<vmem>>, vector<8x4xf32>
    %cst_13 = arith.constant dense<0.000000e+00> : vector<2x4xf32>
    %11 = tpu.matmul %9, %10, %cst_13 {dimension_numbers = #tpu.dot_dimension_numbers<[1], [0], [0], [1], [0, 0, 1, 1], [], []>} : vector<2x8xf32>, vector<8x4xf32>, vector<2x4xf32> -> vector<2x4xf32>
    %12 = arith.addf %8, %11 : vector<2x4xf32>
    %c0_14 = arith.constant 0 : index
    %c0_15 = arith.constant 0 : index
    %13 = vector.load %arg6[%c0_14, %c0_15] : memref<1x4xf32, #tpu.memory_space<vmem>>, vector<1x4xf32>
    %14 = vector.broadcast %13 : vector<1x4xf32> to vector<2x4xf32>
    %15 = arith.addf %12, %14 : vector<2x4xf32>
    %c0_16 = arith.constant 0 : index
    %c0_17 = arith.constant 0 : index
    %16 = vector.load %arg7[%c0_16, %c0_17] : memref<2x4xf32, #tpu.memory_space<vmem>>, vector<2x4xf32>
    tpu.vector_store %arg7[%c0_16, %c0_17], %15 {strides = array<i32>} : memref<2x4xf32, #tpu.memory_space<vmem>>, vector<2x4xf32>,
    return
  }
}

</mosaic_0001>

<bundles_post_ra>
// kernel: tpu_custom_call.1
= control target key start
LH: loop header
LB: loop body
LE: loop exit
PB: predicated region body
PF: predicated region fallthrough
CT: control target
= control target key end

     0   :  { %s435_s0 = inlined_call_operand.vmem [shape: f32[2,8,4], index: 0, kind: input, shape index: {}]   ;;  %s436_s1 = inlined_call_operand.vmem [shape: f32[2,8], index: 1, kind: input, shape index: {}]   ;;  %s437_s2 = inlined_call_operand.vmem [shape: f32[2,8], index: 2, kind: input, shape index: {}]   ;;  %s438_s3 = inlined_call_operand.vmem [shape: f32[8,4], index: 3, kind: input, shape index: {}]   ;;  %s439_s4 = inlined_call_operand.vmem [shape: f32[8,4], index: 4, kind: input, shape index: {}]   ;;  %s440_s5 = inlined_call_operand.vmem [shape: f32[8,4], index: 5, kind: input, shape index: {}]   ;;  %s441_s6 = inlined_call_operand.vmem [shape: f32[1,4], index: 6, kind: input, shape index: {}]   ;;  %s442_s7 = inlined_call_operand.hbm [shape: f32[2,4], index: 7, kind: output, shape index: {}]  }
   0x1   :  { %v27_v0 = vld [vmem:[%s435_s0] sm:$0xff] }
   0x2   :  { %12 = vsyncpa [#allocation3], 0  ;;  %v352_v1 = vmov 0   ;;  %v31_v2 = vld [vmem:[%s439_s4] sm:$0xff]  ;;  %v28_v3 = vld [vmem:[%s435_s0 + $0x8] sm:$0xff]  ;;  %v353_v4 = vmov 0.0   ;;  %v114_v9 = vlaneseq }
   0x3   :  { %327 = vset.pattern.permute.xlu0 %v352_v1  ;;  %308 = vmatprep.subr.mxu0 %v353_v4  ;;  %vm354_vm0 = vmmov 0   ;;  %v30_v5 = vld [vmem:[%s436_s1] sm:$0x3]  ;;  %vm32_vm1 = vcmask 64512   ;;  %vm124_vm2 = vcmask 1041409   ;;  %vm282_vm3 = vcmask 25600  }
   0x4   :  { %109 = vperm.xlu0 %327, %v27_v0   ;;  %310 = vmatprep.mubr.msk.f32.mxu0 %vm354_vm0, %v353_v4  ;;  %v199_v6 = vld [vmem:[%s440_s5] sm:$0xff]  ;;  %v115_v10 = vand.u32 127, %v114_v9  ;;  %v117_v11 = vshrl.u32 %v114_v9, 7 }
   0x5   :  { %309 = vmatpush3.msra.mxu0 %v31_v2  ;;  %313 = vmatprep.subr.mxu1 %v353_v4  ;;  %v29_v7 = vld [vmem:[%s438_s3] sm:$0xff]  ;;  %s355_s3 = smov [#allocation2]  }
   0x6   :  { %318 = vmatprep.subr.mxu0 %v353_v4  ;;  %315 = vmatprep.mubr.msk.f32.mxu1 %vm354_vm0, %v353_v4  ;;  %v198_v8 = vld [vmem:[%s437_s2] sm:$0x3]  ;;  %v118_v13 = vsub.s32 %v115_v10, %v117_v11  ;;  %s290_s5 = sshll.u32 %s355_s3, 4  ;;  %s291_s5 = int_to_ptr.vmem [resolvable:$true] %s290_s5 }
   0x7   :  { %311 = vmatmul.mubr.msk.f32.vlgmr.msra.gmra.mrb[0].mxu0 %vm32_vm1, %v30_v5  ;;  %314 = vmatpush3.msra.mxu1 %v29_v7  ;;  %v301_v25 = vld [vmem:[%s441_s6] ss:$0 sm:$0xff]  ;;  %s328_s13 = scalar_lea.vmem %s291_s5, 32  ;;  %p333_p1 = scmp.lt.s32.totalorder %s291_s5, %s291_s5 }
   0x8   :  { %112 = vperm.xlu0 %327, %v28_v3   ;;  %319 = vmatpush3.msra.mxu0 %v199_v6  ;;  %p329_p0 = scmp.ne.s32.totalorder %s291_s5, %s328_s13  ;;  %p334_p2 = scmp.lt.s32.totalorder %s328_s13, %s328_s13 }
   0x9   :  { %320 = vmatprep.mubr.msk.f32.mxu0 %vm354_vm0, %v353_v4 }
   0xa   :  { %p335_p3 = por %p334_p2, %p333_p1 }
   0xb   :  { %321 = vmatmul.mubr.msk.f32.vlgmr.msra.gmra.mrb[2].mxu0 %vm32_vm1, %v198_v8 }
   0xc   :  { %p336_p4 = pnand %p335_p3, %p329_p0 }
  0x83   :  { %v110_v12 = vpop.permute.xlu0 %109 }
  0x84   :  { %v119_v15 = vrot.slane %v110_v12, %v118_v13 }
  0x87   :  { %v113_v14 = vpop.permute.xlu0 %112 }
  0x88   :  { %v123_v16 = vrot.slane %v113_v14, %v118_v13 }
  0x8a   :  { %v125_v17 = vsel %vm124_vm2, %v123_v16, %v119_v15 }
  0x8b   :  { %316 = vmatmul.mubr.msk.f32.vlgmr.msra.gmra.mrb[0].mxu1 %vm32_vm1, %v125_v17 }
  0xda   :  { %v102_v18 = vpop.f32.mrb[0].mxu0 }
  0xdb   :  { %v312_v19 = vpop.f32.mrb[1].mxu0 }
  0xde   :  { %v269_v20 = vpop.f32.mrb[2].mxu0 }
  0xdf   :  { %v322_v21 = vpop.f32.mrb[3].mxu0 }
 0x15e   :  { %v194_v22 = vpop.f32.mrb[0].mxu1 }
 0x15f   :  { %v195_v23 = vadd.f32 %v194_v22, %v102_v18  ;;  %v317_v24 = vpop.f32.mrb[1].mxu1 }
 0x161   :  { %v273_v26 = vadd.f32 %v269_v20, %v195_v23 }
 0x163   :  { %v281_v27 = vadd.f32 %v301_v25, %v273_v26 }
 0x165   :  { %283 = vst.msk [vmem:[#allocation2] sm:$0x3] %vm282_vm3, %v281_v27 }
 0x166   :  { %339 = shalt.err (!%p336_p4)
}
 0x167   :  { %s340_s16 = scalar_lea.hbm %s442_s7, 32 }
 0x168   :  { %p341_p5 = scmp.ne.s32.totalorder %s442_s7, %s340_s16  ;;  %p344_p6 = scmp.lt.u32.totalorder %s340_s16, %s442_s7 }
 0x16a   :  { %p346_p7 = pnand %p344_p6, %p341_p5 }
 0x16c   :  { %349 = shalt.err (!%p346_p7)
}
 0x16d   :  { %293 = dma.vmem_to_hbm [thread:$0]  %s291_s5, 32, %s442_s7, [#allocation3]  }
 0x16e   :  { %350 = dma.done.wait [#allocation3], 32  }
 0x16f   :  { %351 = vsyncadd [#allocation3], 4294967264 }
 0x170   :  { %297 = vsyncpa [#allocation3], 1 }

</bundles_post_ra>
